<compile_context>
chip_gen: v5e
topology: v5e:2x2
jax: 0.10.0
libtpu: 0.0.40
codegen_flags: <defaults>
</compile_context>

<pallas_src>
import jax
import jax.numpy as jnp
from jax import lax
from jax.experimental import pallas as pl
from jax.experimental.pallas import tpu as pltpu  # noqa: F401  (not needed at this size)

B, L, V, H = 8, 8, 128, 128          # batch, seq, vocab, hidden
TEMPERATURE = 0.05
EPS = 1e-8                            # torch.cosine_similarity eps
NEG_BIG = -1e30                       # finite "drop" value for the CoSent mask
OUT_W = 128                           # lane-dense packed output width


def _scored_pair_kernel(ids1_ref, ids2_ref, labels_ref, table_ref, out_ref):
    # ---- Embedder: one-hot lookup + mean pooling, both sides in ONE matmul ----
    ids = jnp.concatenate([ids1_ref[...], ids2_ref[...]], axis=0)     # [2B, L] int32
    table = table_ref[...]                                            # [V, H]  f32

    # One [1,L,V] iota vreg block; the == broadcasts it over the 2B axis.
    # Lookup is linear, so mean-of-embeddings == (mean one-hot) @ table:
    # reduce over L first, then a single [2B,V] @ [V,H] MXU pass.
    vocab_iota = lax.broadcasted_iota(jnp.int32, (1, L, V), 2)        # [1, L, V]
    onehot = (ids[:, :, None] == vocab_iota).astype(jnp.float32)      # [2B, L, V]
    mean_onehot = jnp.sum(onehot, axis=1) * (1.0 / L)                 # [2B, V]
    emb = jnp.dot(mean_onehot, table,
                  precision=lax.Precision.HIGHEST,
                  preferred_element_type=jnp.float32)                 # [2B, H]
    e1 = emb[:B]                                                      # text_embeddings
    e2 = emb[B:]                                                      # text_pos_embeddings

    # ---- cosine similarity (torch semantics: clamp each norm at eps) ----
    dot = jnp.sum(e1 * e2, axis=-1, keepdims=True)                    # [B, 1]
    n1sq = jnp.sum(e1 * e1, axis=-1, keepdims=True)                   # [B, 1]
    n2sq = jnp.sum(e2 * e2, axis=-1, keepdims=True)                   # [B, 1]
    # 1/max(||x||, eps) == rsqrt(max(||x||^2, eps^2))  -> EUP, no sqrt/div on VPU
    cos = (dot
           * lax.rsqrt(jnp.maximum(n1sq, EPS * EPS))
           * lax.rsqrt(jnp.maximum(n2sq, EPS * EPS)))                 # [B, 1]
    cos_row = jnp.transpose(cos)                                      # [1, B]

    # ---- CoSentLoss(temperature), mask built in-kernel ----
    # loss = logsumexp( { (p[i]-p[j])/tau : labels[j] > labels[i] } U {0} )
    labels_row = labels_ref[...]                                      # [1, B]
    labels_col = jnp.transpose(labels_row)                            # [B, 1]
    keep = labels_row > labels_col                                    # [B, B]: labels[j] > labels[i]
    diff = (cos - cos_row) * (1.0 / TEMPERATURE)                      # [B, B]: p[i] - p[j]
    masked = jnp.where(keep, diff, NEG_BIG)                           # finite drop value
    m = jnp.maximum(jnp.max(masked, keepdims=True), 0.0)              # [1, 1], include the 0 term
    s = jnp.sum(jnp.exp(masked - m), keepdims=True) + jnp.exp(-m)     # [1, 1]
    loss2d = m + jnp.log(s)                                           # [1, 1]

    # ---- single lane-dense packed output: pred in lanes 0..B-1, loss in lane B ----
    out_ref[...] = jnp.concatenate(
        [cos_row, loss2d, jnp.zeros((1, OUT_W - B - 1), jnp.float32)], axis=1)


@jax.jit
def embedder_for_scored_pair_train(text_ids, text_pair_ids, labels, embed_table):
    packed = pl.pallas_call(
        _scored_pair_kernel,
        out_shape=jax.ShapeDtypeStruct((1, OUT_W), jnp.float32),
        in_specs=[pl.BlockSpec((B, L), lambda: (0, 0)),
                  pl.BlockSpec((B, L), lambda: (0, 0)),
                  pl.BlockSpec((1, B), lambda: (0, 0)),
                  pl.BlockSpec((V, H), lambda: (0, 0))],
        out_specs=pl.BlockSpec((1, OUT_W), lambda: (0, 0)),
    )(text_ids.astype(jnp.int32),
      text_pair_ids.astype(jnp.int32),
      labels.reshape(1, B).astype(jnp.float32),
      embed_table)
    return {'loss': packed[0, B], 'predict_labels': packed[0, :B]}


def _reference(text_ids, text_pair_ids, labels, table):
    def embed(ids):
        return jnp.mean(table[ids], axis=1)
    e1, e2 = embed(text_ids), embed(text_pair_ids)
    n1 = jnp.maximum(jnp.linalg.norm(e1, axis=-1), EPS)   # torch clamps each norm
    n2 = jnp.maximum(jnp.linalg.norm(e2, axis=-1), EPS)
    cos = jnp.sum(e1 * e2, axis=-1) / (n1 * n2)
    p = cos / TEMPERATURE
    diff = p[:, None] - p[None, :]
    keep = labels[None, :] > labels[:, None]
    vals = jnp.where(keep, diff, -jnp.inf).reshape(-1)
    loss = jax.scipy.special.logsumexp(jnp.concatenate([vals, jnp.zeros((1,))]))
    return loss, cos


if __name__ == "__main__":
    key = jax.random.PRNGKey(0)
    k_ids, k_pair, k_lab, k_tab = jax.random.split(key, 4)

    text_ids = jax.random.randint(k_ids, (B, L), 0, V, dtype=jnp.int32)
    text_pair_ids = jax.random.randint(k_pair, (B, L), 0, V, dtype=jnp.int32)
    labels = jax.random.uniform(k_lab, (B,), dtype=jnp.float32)       # scored-pair labels
    embed_table = (jax.random.normal(k_tab, (V, H), dtype=jnp.float32) * 0.02)

    out = embedder_for_scored_pair_train(text_ids, text_pair_ids, labels, embed_table)
    jax.block_until_ready(out)

    ref_loss, ref_pred = _reference(text_ids, text_pair_ids, labels, embed_table)
    assert jnp.allclose(out['predict_labels'], ref_pred, rtol=1e-4, atol=1e-5), \
        (out['predict_labels'], ref_pred)
    assert jnp.allclose(out['loss'], ref_loss, rtol=1e-4, atol=5e-5), \
        (out['loss'], ref_loss)

    print("KERNEL_OK")
</pallas_src>

<mosaic_0001>
module attributes {stable_mosaic.version = 11 : i64} {
  func.func @_scored_pair_kernel(%arg0: memref<8x8xi32, #tpu.memory_space<vmem>>, %arg1: memref<8x8xi32, #tpu.memory_space<vmem>>, %arg2: memref<1x8xf32, #tpu.memory_space<vmem>>, %arg3: memref<128x128xf32, #tpu.memory_space<vmem>>, %arg4: memref<1x128xf32, #tpu.memory_space<vmem>>) attributes {dimension_semantics = [], scalar_prefetch = 0 : i64, scratch_operands = 0 : i64, tpu.core_type = #tpu.core_type<tc>} {
    %c0 = arith.constant 0 : index
    %c0_0 = arith.constant 0 : index
    %0 = vector.load %arg0[%c0, %c0_0] : memref<8x8xi32, #tpu.memory_space<vmem>>, vector<8x8xi32>
    %c0_1 = arith.constant 0 : index
    %c0_2 = arith.constant 0 : index
    %1 = vector.load %arg1[%c0_1, %c0_2] : memref<8x8xi32, #tpu.memory_space<vmem>>, vector<8x8xi32>
    %2 = tpu.concatenate %0, %1 in 0 : vector<8x8xi32>, vector<8x8xi32> -> vector<16x8xi32>
    %c0_3 = arith.constant 0 : index
    %c0_4 = arith.constant 0 : index
    %3 = vector.load %arg3[%c0_3, %c0_4] : memref<128x128xf32, #tpu.memory_space<vmem>>, vector<128x128xf32>
    %4 = tpu.iota {dimensions = array<i32: 2>} : vector<1x8x128xi32>
    %5 = vector.shape_cast %2 : vector<16x8xi32> to vector<16x8x1xi32>
    %6 = vector.broadcast %5 : vector<16x8x1xi32> to vector<16x8x128xi32>
    %7 = vector.broadcast %4 : vector<1x8x128xi32> to vector<16x8x128xi32>
    %8 = arith.cmpi eq, %6, %7 : vector<16x8x128xi32>
    %9 = arith.extui %8 : vector<16x8x128xi1> to vector<16x8x128xi32>
    %10 = arith.sitofp %9 : vector<16x8x128xi32> to vector<16x8x128xf32>
    %cst = arith.constant dense<0.000000e+00> : vector<16x128xf32>
    %11 = vector.multi_reduction <add>, %10, %cst [1] : vector<16x8x128xf32> to vector<16x128xf32>
    %cst_5 = arith.constant 1.250000e-01 : f32
    %12 = vector.broadcast %cst_5 : f32 to vector<16x128xf32>
    %13 = arith.mulf %11, %12 : vector<16x128xf32>
    %cst_6 = arith.constant dense<0.000000e+00> : vector<16x128xf32>
    %14 = tpu.matmul %13, %3, %cst_6 {dimension_numbers = #tpu.dot_dimension_numbers<[1], [0], [0], [1], [0, 0, 1, 1], [], []>, precision = #tpu.contract_precision<fp32>} : vector<16x128xf32>, vector<128x128xf32>, vector<16x128xf32> -> vector<16x128xf32>
    %15 = vector.extract_strided_slice %14 {offsets = [0, 0], sizes = [8, 128], strides = [1, 1]} : vector<16x128xf32> to vector<8x128xf32>
    %16 = vector.extract_strided_slice %14 {offsets = [8, 0], sizes = [8, 128], strides = [1, 1]} : vector<16x128xf32> to vector<8x128xf32>
    %17 = arith.mulf %15, %16 : vector<8x128xf32>
    %cst_7 = arith.constant dense<0.000000e+00> : vector<8xf32>
    %18 = vector.multi_reduction <add>, %17, %cst_7 [1] : vector<8x128xf32> to vector<8xf32>
    %19 = vector.shape_cast %18 : vector<8xf32> to vector<8x1xf32>
    %20 = arith.mulf %15, %15 : vector<8x128xf32>
    %cst_8 = arith.constant dense<0.000000e+00> : vector<8xf32>
    %21 = vector.multi_reduction <add>, %20, %cst_8 [1] : vector<8x128xf32> to vector<8xf32>
    %22 = vector.shape_cast %21 : vector<8xf32> to vector<8x1xf32>
    %23 = arith.mulf %16, %16 : vector<8x128xf32>
    %cst_9 = arith.constant dense<0.000000e+00> : vector<8xf32>
    %24 = vector.multi_reduction <add>, %23, %cst_9 [1] : vector<8x128xf32> to vector<8xf32>
    %25 = vector.shape_cast %24 : vector<8xf32> to vector<8x1xf32>
    %cst_10 = arith.constant 1.000000e-16 : f32
    %26 = vector.broadcast %cst_10 : f32 to vector<8x1xf32>
    %27 = arith.maximumf %22, %26 : vector<8x1xf32>
    %28 = math.rsqrt %27 : vector<8x1xf32>
    %29 = arith.mulf %19, %28 : vector<8x1xf32>
    %cst_11 = arith.constant 1.000000e-16 : f32
    %30 = vector.broadcast %cst_11 : f32 to vector<8x1xf32>
    %31 = arith.maximumf %25, %30 : vector<8x1xf32>
    %32 = math.rsqrt %31 : vector<8x1xf32>
    %33 = arith.mulf %29, %32 : vector<8x1xf32>
    %34 = tpu.transpose %33, [1, 0] : vector<8x1xf32> -> vector<1x8xf32>
    %c0_12 = arith.constant 0 : index
    %c0_13 = arith.constant 0 : index
    %35 = vector.load %arg2[%c0_12, %c0_13] : memref<1x8xf32, #tpu.memory_space<vmem>>, vector<1x8xf32>
    %36 = tpu.transpose %35, [1, 0] : vector<1x8xf32> -> vector<8x1xf32>
    %37 = vector.broadcast %35 : vector<1x8xf32> to vector<8x8xf32>
    %38 = vector.broadcast %36 : vector<8x1xf32> to vector<8x8xf32>
    %39 = arith.cmpf ogt, %37, %38 : vector<8x8xf32>
    %40 = vector.broadcast %33 : vector<8x1xf32> to vector<8x8xf32>
    %41 = vector.broadcast %34 : vector<1x8xf32> to vector<8x8xf32>
    %42 = arith.subf %40, %41 : vector<8x8xf32>
    %cst_14 = arith.constant 2.000000e+01 : f32
    %43 = vector.broadcast %cst_14 : f32 to vector<8x8xf32>
    %44 = arith.mulf %42, %43 : vector<8x8xf32>
    %cst_15 = arith.constant -1.000000e+30 : f32
    %45 = vector.broadcast %cst_15 : f32 to vector<8x8xf32>
    %46 = arith.select %39, %44, %45 : vector<8x8xi1>, vector<8x8xf32>
    %47 = vector.shape_cast %46 : vector<8x8xf32> to vector<1x8x8xf32>
    %cst_16 = arith.constant dense<0xFF800000> : vector<1xf32>
    %48 = vector.multi_reduction <maximumf>, %47, %cst_16 [1, 2] : vector<1x8x8xf32> to vector<1xf32>
    %49 = vector.shape_cast %48 : vector<1xf32> to vector<1x1x1xf32>
    %50 = vector.extract %49[0, 0, 0] : f32 from vector<1x1x1xf32>
    %51 = vector.broadcast %50 : f32 to vector<1x1xf32>
    %cst_17 = arith.constant 0.000000e+00 : f32
    %52 = vector.broadcast %cst_17 : f32 to vector<1x1xf32>
    %53 = arith.maximumf %51, %52 : vector<1x1xf32>
    %54 = vector.broadcast %53 : vector<1x1xf32> to vector<8x8xf32>
    %55 = arith.subf %46, %54 : vector<8x8xf32>
    %56 = math.exp %55 : vector<8x8xf32>
    %57 = vector.shape_cast %56 : vector<8x8xf32> to vector<1x8x8xf32>
    %cst_18 = arith.constant dense<0.000000e+00> : vector<1xf32>
    %58 = vector.multi_reduction <add>, %57, %cst_18 [1, 2] : vector<1x8x8xf32> to vector<1xf32>
    %59 = vector.shape_cast %58 : vector<1xf32> to vector<1x1x1xf32>
    %60 = vector.extract %59[0, 0, 0] : f32 from vector<1x1x1xf32>
    %61 = vector.broadcast %60 : f32 to vector<1x1xf32>
    %cst_19 = arith.constant 0.000000e+00 : f32
    %62 = vector.broadcast %cst_19 : f32 to vector<1x1xf32>
    %63 = arith.subf %62, %53 : vector<1x1xf32>
    %64 = math.exp %63 : vector<1x1xf32>
    %65 = arith.addf %61, %64 : vector<1x1xf32>
    %66 = math.log %65 : vector<1x1xf32>
    %67 = arith.addf %53, %66 : vector<1x1xf32>
    %cst_20 = arith.constant 0.000000e+00 : f32
    %68 = vector.broadcast %cst_20 : f32 to vector<1x119xf32>
    %69 = tpu.concatenate %34, %67, %68 in 1 : vector<1x8xf32>, vector<1x1xf32>, vector<1x119xf32> -> vector<1x128xf32>
    %c0_21 = arith.constant 0 : index
    %c0_22 = arith.constant 0 : index
    %70 = vector.load %arg4[%c0_21, %c0_22] : memref<1x128xf32, #tpu.memory_space<vmem>>, vector<1x128xf32>
    tpu.vector_store %arg4[%c0_21, %c0_22], %69 {strides = array<i32>} : memref<1x128xf32, #tpu.memory_space<vmem>>, vector<1x128xf32>,
    return
  }
}

</mosaic_0001>

<bundles_post_ra>
// kernel: embedder_for_scored_pair_train.1
= control target key start
LH: loop header
LB: loop body
LE: loop exit
PB: predicated region body
PF: predicated region fallthrough
CT: control target
= control target key end

     0   :  { %9 = vsyncpa [#allocation3], 0  ;;  %s1392_s0 = inlined_call_operand.hbm [shape: s32[8,8], index: 0, kind: input, shape index: {}]   ;;  %s1393_s1 = inlined_call_operand.hbm [shape: s32[8,8], index: 1, kind: input, shape index: {}]   ;;  %s1394_s2 = inlined_call_operand.vmem [shape: f32[1,8], index: 2, kind: input, shape index: {}]   ;;  %s1395_s3 = inlined_call_operand.hbm [shape: f32[128,128], index: 3, kind: input, shape index: {}]   ;;  %s1396_s4 = inlined_call_operand.vmem [shape: f32[1,128], index: 4, kind: output, shape index: {}]  }
   0x1   :  { %10 = vsyncpa [#allocation5], 0  ;;  %s27_s17 = sshll.u32 %s1393_s1, 4  ;;  %s1069_s18 = smov [#allocation4]   ;;  %s28_s17 = int_to_ptr.hbm [resolvable:$true] %s27_s17 }
   0x2   :  { %s29_s19 = sshll.u32 %s1069_s18, 4  ;;  %s16_s22 = sshll.u32 %s1392_s0, 4  ;;  %s30_s19 = int_to_ptr.vmem [resolvable:$true] %s29_s19  ;;  %s17_s22 = int_to_ptr.hbm [resolvable:$true] %s16_s22 }
   0x3   :  { %32 = dma.hbm_to_vmem [thread:$0]  %s28_s17, 128, %s30_s19, [#allocation5]  }
   0x4   :  { %s1070_s23 = smov [#allocation2]   ;;  %s39_s27 = sshll.u32 %s1395_s3, 4  ;;  %s40_s27 = int_to_ptr.hbm [resolvable:$true] %s39_s27 }
   0x5   :  { %s18_s24 = sshll.u32 %s1070_s23, 4  ;;  %s1071_s1 = smov [#allocation6]   ;;  %s19_s24 = int_to_ptr.vmem [resolvable:$true] %s18_s24 }
   0x6   :  { %21 = dma.hbm_to_vmem [thread:$0]  %s17_s22, 128, %s19_s24, [#allocation3]  }
   0x7   :  { %s41_s28 = sshll.u32 %s1071_s1, 4  ;;  %s1072_s29 = smov 128   ;;  %s42_s28 = int_to_ptr.vmem [resolvable:$true] %s41_s28 }
   0x8   :  { %s1073_s30 = smov 8  }
   0x9   :  { %47 = dma.hbm_to_vmem [thread:$0]  %s40_s27, 2048, %s42_s28, [#allocation5], %s1072_s29, %s1072_s29, %s1073_s30  }
   0xa   :  { %1065 = dma.done.wait [#allocation3], 128  }
   0xb   :  { %1066 = vsyncadd [#allocation3], 4294967168 }
   0xc   :  { %1067 = dma.done.wait [#allocation5], 2176  }
   0xd   :  { %1068 = vsyncadd [#allocation5], 4294965120  ;;  %v78_v0 = vlaneseq  ;;  %v60_v2 = vld [vmem:[#allocation2] sm:$0xff]  ;;  %v61_v9 = vld [vmem:[#allocation4] sm:$0xff]  ;;  %vm368_vm8 = vcmask 1041409   ;;  %vm370_vm12 = vcmask 1042434  }
   0xe   :  { %v108_v3 = vperm.slane %v60_v2, 4  ;;  %v94_v4 = vperm.slane %v60_v2, 2  ;;  %v80_v5 = vperm.slane %v60_v2, 0  ;;  %v115_v6 = vperm.slane %v60_v2, 5  ;;  %v77_v20 = vld [vmem:[#allocation6 + $0x78] sm:$0xff]  ;;  %v76_v22 = vld [vmem:[#allocation6 + $0x70] sm:$0xff] }
   0xf   :  { %v82_v1 = vshrl.u32 %v78_v0, 7  ;;  %v101_v7 = vperm.slane %v60_v2, 3  ;;  %v87_v8 = vperm.slane %v60_v2, 1  ;;  %v136_v10 = vperm.slane %v61_v9, 0  ;;  %v75_v27 = vld [vmem:[#allocation6 + $0x68] sm:$0xff]  ;;  %v74_v31 = vld [vmem:[#allocation6 + $0x60] sm:$0xff] }
  0x10   :  { %v129_v11 = vperm.slane %v60_v2, 7  ;;  %v122_v12 = vperm.slane %v60_v2, 6  ;;  %v157_v13 = vperm.slane %v61_v9, 3  ;;  %v150_v14 = vperm.slane %v61_v9, 2  ;;  %v73_v36 = vld [vmem:[#allocation6 + $0x58] sm:$0xff]  ;;  %v72_v42 = vld [vmem:[#allocation6 + $0x50] sm:$0xff] }
  0x11   :  { %979 = vset.pattern.permute.xlu2 %v82_v1  ;;  %978 = vset.pattern.permute.xlu1 %v82_v1  ;;  %v143_v15 = vperm.slane %v61_v9, 1  ;;  %v178_v16 = vperm.slane %v61_v9, 6  ;;  %v171_v17 = vperm.slane %v61_v9, 5  ;;  %v164_v18 = vperm.slane %v61_v9, 4  ;;  %v71_v47 = vld [vmem:[#allocation6 + $0x48] sm:$0xff]  ;;  %v70_v53 = vld [vmem:[#allocation6 + $0x40] sm:$0xff] }
  0x12   :  { %977 = vset.pattern.permute.xlu0 %v82_v1  ;;  %v185_v19 = vperm.slane %v61_v9, 7  ;;  %v1111_v21 = vand.u32 4294901760, %v77_v20  ;;  %v1114_v24 = vand.u32 4294901760, %v76_v22  ;;  %v1126_v30 = vand.u32 4294901760, %v75_v27  ;;  %v69_v60 = vld [vmem:[#allocation6 + $0x38] sm:$0xff]  ;;  %v68_v2 = vld [vmem:[#allocation6 + $0x30] sm:$0xff] }
  0x13   :  { %v1130_v35 = vand.u32 4294901760, %v74_v31  ;;  %v1137_v40 = vand.u32 4294901760, %v73_v36  ;;  %v1145_v46 = vand.u32 4294901760, %v72_v42  ;;  %v1153_v52 = vand.u32 4294901760, %v71_v47  ;;  %v67_v9 = vld [vmem:[#allocation6 + $0x28] sm:$0xff] }
  0x14   :  { %v441_v23 = vsub.f32 %v77_v20, %v1111_v21  ;;  %605 = vmatpush.msra.mxu3 %v1111_v21  ;;  %392 = vmatpush.msra.mxu0 %v1111_v21  ;;  %v447_v26 = vsub.f32 %v76_v22, %v1114_v24  ;;  %v453_v34 = vsub.f32 %v75_v27, %v1126_v30  ;;  %v1158_v54 = vand.u32 127, %v78_v0 }
  0x15   :  { %v459_v39 = vsub.f32 %v74_v31, %v1130_v35  ;;  %v465_v45 = vsub.f32 %v73_v36, %v1137_v40  ;;  %v471_v51 = vsub.f32 %v72_v42, %v1145_v46  ;;  %v1161_v57 = vand.u32 4294901760, %v70_v53 }
  0x16   :  { %v1118_v25 = vand.u32 4294901760, %v441_v23  ;;  %547 = vmatpush.msra.mxu2 %v441_v23  ;;  %607 = vmatpush.msra.mxu3 %v1114_v24  ;;  %v1124_v29 = vand.u32 4294901760, %v447_v26  ;;  %v1134_v38 = vand.u32 4294901760, %v453_v34  ;;  %v477_v59 = vsub.f32 %v71_v47, %v1153_v52 }
  0x17   :  { %394 = vmatpush.msra.mxu0 %v1114_v24  ;;  %v1142_v44 = vand.u32 4294901760, %v459_v39  ;;  %v1150_v50 = vand.u32 4294901760, %v465_v45  ;;  %v1163_v58 = vand.u32 4294901760, %v471_v51  ;;  %v483_v62 = vsub.f32 %v70_v53, %v1161_v57 }
  0x18   :  { %v443_v28 = vsub.f32 %v441_v23, %v1118_v25  ;;  %550 = vmatpush.msra.mxu2 %v447_v26  ;;  %v449_v33 = vsub.f32 %v447_v26, %v1124_v29  ;;  %609 = vmatpush.msra.mxu3 %v1126_v30  ;;  %v455_v43 = vsub.f32 %v453_v34, %v1134_v38  ;;  %v1168_v63 = vand.u32 4294901760, %v69_v60  ;;  %v65_v26 = vld [vmem:[#allocation6 + $0x18] sm:$0xff] }
  0x19   :  { %113 = vperm.xlu2 %979, %v108_v3   ;;  %99 = vperm.xlu1 %978, %v94_v4   ;;  %v461_v49 = vsub.f32 %v459_v39, %v1142_v44  ;;  %v467_v56 = vsub.f32 %v465_v45, %v1150_v50  ;;  %v473_v0 = vsub.f32 %v471_v51, %v1163_v58  ;;  %v1172_v1 = vand.u32 4294901760, %v477_v59 }
  0x1a   :  { %85 = vperm.xlu0 %977, %v80_v5   ;;  %v444_v32 = vand.u32 4294901760, %v443_v28  ;;  %396 = vmatpush.msra.mxu0 %v1126_v30  ;;  %v450_v37 = vand.u32 4294901760, %v449_v33  ;;  %v456_v48 = vand.u32 4294901760, %v455_v43  ;;  %v1176_v3 = vand.u32 4294901760, %v483_v62  ;;  %v64_v33 = vld [vmem:[#allocation6 + $0x10] sm:$0xff]  ;;  %v63_v43 = vld [vmem:[#allocation6 + $0x8] sm:$0xff] }
  0x1b   :  { %553 = vmatpush.msra.mxu2 %v453_v34  ;;  %611 = vmatpush.msra.mxu3 %v1130_v35  ;;  %v462_v55 = vand.u32 4294901760, %v461_v49  ;;  %v468_v61 = vand.u32 4294901760, %v467_v56  ;;  %v489_v4 = vsub.f32 %v69_v60, %v1168_v63  ;;  %v1209_v36 = vand.u32 4294901760, %v65_v26  ;;  %v62_v56 = vld [vmem:[#allocation6] sm:$0xff] }
  0x1c   :  { %445 = vmatpush.msra.mxu1 %v444_v32  ;;  %398 = vmatpush.msra.mxu0 %v1130_v35  ;;  %v1215_v42 = vand.u32 4294901760, %v64_v33  ;;  %vm372_vm13 = vcmask 1043459   ;;  %vm374_vm14 = vcmask 1044484  }
  0x1d   :  { %556 = vmatpush.msra.mxu2 %v459_v39  ;;  %613 = vmatpush.msra.mxu3 %v1137_v40 }
  0x1e   :  { %451 = vmatpush.msra.mxu1 %v450_v37  ;;  %400 = vmatpush.msra.mxu0 %v1137_v40  ;;  %v519_v53 = vsub.f32 %v64_v33, %v1215_v42 }
  0x1f   :  { %559 = vmatpush.msra.mxu2 %v465_v45  ;;  %615 = vmatpush.msra.mxu3 %v1145_v46 }
  0x20   :  { %402 = vmatpush.msra.mxu0 %v1145_v46  ;;  %457 = vmatpush.msra.mxu1 %v456_v48  ;;  %v513_v48 = vsub.f32 %v65_v26, %v1209_v36 }
  0x21   :  { %120 = vperm.xlu2 %979, %v115_v6   ;;  %106 = vperm.xlu1 %978, %v101_v7   ;;  %v474_v6 = vand.u32 4294901760, %v473_v0  ;;  %v479_v7 = vsub.f32 %v477_v59, %v1172_v1 }
  0x22   :  { %92 = vperm.xlu0 %977, %v87_v8   ;;  %562 = vmatpush.msra.mxu2 %v471_v51  ;;  %v1181_v8 = vand.u32 4294901760, %v68_v2 }
  0x23   :  { %617 = vmatpush.msra.mxu3 %v1153_v52  ;;  %463 = vmatpush.msra.mxu1 %v462_v55  ;;  %v1222_v55 = vand.u32 4294901760, %v63_v43 }
  0x24   :  { %404 = vmatpush.msra.mxu0 %v1153_v52  ;;  %565 = vmatpush.msra.mxu2 %v477_v59 }
  0x25   :  { %619 = vmatpush.msra.mxu3 %v1161_v57  ;;  %469 = vmatpush.msra.mxu1 %v468_v61  ;;  %v1226_v61 = vand.u32 4294901760, %v513_v48  ;;  %v525_v0 = vsub.f32 %v63_v43, %v1222_v55 }
  0x26   :  { %406 = vmatpush.msra.mxu0 %v1161_v57  ;;  %568 = vmatpush.msra.mxu2 %v483_v62 }
  0x27   :  { %621 = vmatpush.msra.mxu3 %v1168_v63  ;;  %475 = vmatpush.msra.mxu1 %v474_v6  ;;  %v515_v6 = vsub.f32 %v513_v48, %v1226_v61 }
  0x28   :  { %408 = vmatpush.msra.mxu0 %v1168_v63  ;;  %571 = vmatpush.msra.mxu2 %v489_v4 }
  0x29   :  { %141 = vperm.xlu2 %979, %v136_v10   ;;  %134 = vperm.xlu1 %978, %v129_v11   ;;  %v485_v10 = vsub.f32 %v483_v62, %v1176_v3  ;;  %v1185_v11 = vand.u32 4294901760, %v489_v4  ;;  %v1229_v62 = vand.u32 4294901760, %v519_v53 }
  0x2a   :  { %127 = vperm.xlu0 %977, %v122_v12   ;;  %v1074_v12 = vmov 0.0   ;;  %623 = vmatpush.msra.mxu3 %v1181_v8 }
  0x2b   :  { %410 = vmatpush.msra.mxu0 %v1181_v8 }
  0x31   :  { %162 = vperm.xlu2 %979, %v157_v13   ;;  %155 = vperm.xlu1 %978, %v150_v14   ;;  %v480_v14 = vand.u32 4294901760, %v479_v7 }
  0x32   :  { %148 = vperm.xlu0 %977, %v143_v15   ;;  %v495_v15 = vsub.f32 %v68_v2, %v1181_v8  ;;  %v1232_v2 = vand.u32 4294901760, %v62_v56 }
  0x33   :  { %481 = vmatpush.msra.mxu1 %v480_v14 }
  0x34   :  { %v1197_v20 = vand.u32 4294901760, %v495_v15  ;;  %574 = vmatpush.msra.mxu2 %v495_v15 }
  0x36   :  { %v497_v31 = vsub.f32 %v495_v15, %v1197_v20 }
  0x38   :  { %v498_v39 = vand.u32 4294901760, %v497_v31 }
  0x39   :  { %183 = vperm.xlu2 %979, %v178_v16   ;;  %176 = vperm.xlu1 %978, %v171_v17   ;;  %v1192_v16 = vand.u32 4294901760, %v67_v9  ;;  %v66_v17 = vld [vmem:[#allocation6 + $0x20] sm:$0xff] }
  0x3a   :  { %169 = vperm.xlu0 %977, %v164_v18   ;;  %v486_v18 = vand.u32 4294901760, %v485_v10  ;;  %v1200_v23 = vand.u32 4294901760, %v66_v17  ;;  %v1238_v10 = vand.u32 4294901760, %v525_v0 }
  0x3b   :  { %v501_v22 = vsub.f32 %v67_v9, %v1192_v16  ;;  %625 = vmatpush.msra.mxu3 %v1192_v16  ;;  %412 = vmatpush.msra.mxu0 %v1192_v16  ;;  %v521_v9 = vsub.f32 %v519_v53, %v1229_v62 }
  0x3c   :  { %487 = vmatpush.msra.mxu1 %v486_v18  ;;  %v507_v34 = vsub.f32 %v66_v17, %v1200_v23  ;;  %v516_v17 = vand.u32 4294901760, %v515_v6  ;;  %v527_v31 = vsub.f32 %v525_v0, %v1238_v10 }
  0x3d   :  { %v1206_v32 = vand.u32 4294901760, %v501_v22  ;;  %577 = vmatpush.msra.mxu2 %v501_v22  ;;  %627 = vmatpush.msra.mxu3 %v1200_v23 }
  0x3e   :  { %414 = vmatpush.msra.mxu0 %v1200_v23  ;;  %v1217_v47 = vand.u32 4294901760, %v507_v34 }
  0x3f   :  { %580 = vmatpush.msra.mxu2 %v507_v34  ;;  %629 = vmatpush.msra.mxu3 %v1209_v36 }
  0x40   :  { %416 = vmatpush.msra.mxu0 %v1209_v36  ;;  %v509_v60 = vsub.f32 %v507_v34, %v1217_v47 }
  0x41   :  { %583 = vmatpush.msra.mxu2 %v513_v48  ;;  %631 = vmatpush.msra.mxu3 %v1215_v42 }
  0x42   :  { %190 = vperm.xlu0 %977, %v185_v19   ;;  %v491_v19 = vsub.f32 %v489_v4, %v1185_v11  ;;  %418 = vmatpush.msra.mxu0 %v1215_v42 }
  0x43   :  { %586 = vmatpush.msra.mxu2 %v519_v53  ;;  %633 = vmatpush.msra.mxu3 %v1222_v55 }
  0x44   :  { %v492_v28 = vand.u32 4294901760, %v491_v19  ;;  %420 = vmatpush.msra.mxu0 %v1222_v55  ;;  %v522_v19 = vand.u32 4294901760, %v521_v9 }
  0x45   :  { %589 = vmatpush.msra.mxu2 %v525_v0  ;;  %635 = vmatpush.msra.mxu3 %v1232_v2 }
  0x46   :  { %493 = vmatpush.msra.mxu1 %v492_v28  ;;  %422 = vmatpush.msra.mxu0 %v1232_v2 }
  0x47   :  { %950 = vmatpush.msrb.mxu3 %v1111_v21 }
  0x48   :  { %499 = vmatpush.msra.mxu1 %v498_v39  ;;  %652 = vmatpush.msrb.mxu0 %v1118_v25 }
  0x49   :  { %951 = vmatpush.msrb.mxu3 %v1114_v24 }
  0x4a   :  { %656 = vmatpush.msrb.mxu0 %v1124_v29 }
  0x4b   :  { %952 = vmatpush.msrb.mxu3 %v1126_v30 }
  0x4c   :  { %660 = vmatpush.msrb.mxu0 %v1134_v38 }
  0x4d   :  { %953 = vmatpush.msrb.mxu3 %v1130_v35 }
  0x4e   :  { %664 = vmatpush.msrb.mxu0 %v1142_v44 }
  0x4f   :  { %954 = vmatpush.msrb.mxu3 %v1137_v40 }
  0x50   :  { %668 = vmatpush.msrb.mxu0 %v1150_v50 }
  0x51   :  { %955 = vmatpush.msrb.mxu3 %v1145_v46 }
  0x52   :  { %672 = vmatpush.msrb.mxu0 %v1163_v58 }
  0x53   :  { %956 = vmatpush.msrb.mxu3 %v1153_v52 }
  0x54   :  { %676 = vmatpush.msrb.mxu0 %v1172_v1 }
  0x55   :  { %957 = vmatpush.msrb.mxu3 %v1161_v57 }
  0x56   :  { %680 = vmatpush.msrb.mxu0 %v1176_v3 }
  0x57   :  { %958 = vmatpush.msrb.mxu3 %v1168_v63 }
  0x58   :  { %684 = vmatpush.msrb.mxu0 %v1185_v11 }
  0x59   :  { %959 = vmatpush.msrb.mxu3 %v1181_v8 }
  0x5a   :  { %688 = vmatpush.msrb.mxu0 %v1197_v20 }
  0x5b   :  { %960 = vmatpush.msrb.mxu3 %v1192_v16 }
  0x5c   :  { %692 = vmatpush.msrb.mxu0 %v1206_v32 }
  0x5d   :  { %961 = vmatpush.msrb.mxu3 %v1200_v23 }
  0x5e   :  { %696 = vmatpush.msrb.mxu0 %v1217_v47 }
  0x5f   :  { %962 = vmatpush.msrb.mxu3 %v1209_v36 }
  0x60   :  { %700 = vmatpush.msrb.mxu0 %v1226_v61 }
  0x61   :  { %963 = vmatpush.msrb.mxu3 %v1215_v42 }
  0x62   :  { %704 = vmatpush.msrb.mxu0 %v1229_v62 }
  0x63   :  { %964 = vmatpush.msrb.mxu3 %v1222_v55 }
  0x64   :  { %708 = vmatpush.msrb.mxu0 %v1238_v10 }
  0x65   :  { %965 = vmatpush.msrb.mxu3 %v1232_v2 }
  0x73   :  { %v114_v41 = vpop.permute.xlu2 %113 }
  0x74   :  { %vm196_vm0 = vcmp.eq.s32.totalorder %v114_v41, %v1158_v54  ;;  %v503_v41 = vsub.f32 %v501_v22, %v1206_v32 }
  0x75   :  { %v922_v13 = vsel %vm196_vm0, 1.0, %v1074_v12 }
  0x76   :  { %v264_v27 = vrot.slane %v922_v13, 4  ;;  %v504_v51 = vand.u32 4294901760, %v503_v41  ;;  %v528_v41 = vand.u32 4294901760, %v527_v31 }
  0x78   :  { %v265_v45 = vadd.f32 %v922_v13, %v264_v27  ;;  %505 = vmatpush.msra.mxu1 %v504_v51  ;;  %v531_v13 = vsub.f32 %v62_v56, %v1232_v2 }
  0x7a   :  { %v266_v4 = vrot.slane %v265_v45, 2  ;;  %592 = vmatpush.msra.mxu2 %v531_v13  ;;  %v1250_v33 = vand.u32 4294901760, %v531_v13 }
  0x7b   :  { %v121_v5 = vpop.permute.xlu2 %120 }
  0x7c   :  { %vm197_vm1 = vcmp.eq.s32.totalorder %v121_v5, %v1158_v54  ;;  %v510_v5 = vand.u32 4294901760, %v509_v60  ;;  %v267_v22 = vadd.f32 %v266_v4, %v265_v45  ;;  %934 = vmatpush.msrb.mxu2 %v1118_v25  ;;  %v533_v43 = vsub.f32 %v531_v13, %v1250_v33  ;;  %712 = vmatpush.msrb.mxu0 %v1250_v33 }
  0x7d   :  { %v923_v37 = vsel %vm197_vm1, 1.0, %v1074_v12  ;;  %vm376_vm1 = vcmask 1045509  }
  0x7e   :  { %v270_v59 = vrot.slane %v923_v37, 4  ;;  %511 = vmatpush.msra.mxu1 %v510_v5  ;;  %935 = vmatpush.msrb.mxu2 %v1124_v29  ;;  %v534_v53 = vand.u32 4294901760, %v533_v43 }
  0x80   :  { %v271_v14 = vadd.f32 %v923_v37, %v270_v59  ;;  %517 = vmatpush.msra.mxu1 %v516_v17  ;;  %936 = vmatpush.msrb.mxu2 %v1134_v38 }
  0x82   :  { %v272_v34 = vrot.slane %v271_v14, 2  ;;  %523 = vmatpush.msra.mxu1 %v522_v19  ;;  %937 = vmatpush.msrb.mxu2 %v1142_v44 }
  0x83   :  { %v142_v49 = vpop.permute.xlu2 %141 }
  0x84   :  { %vm200_vm4 = vcmp.eq.s32.totalorder %v142_v49, %v1158_v54  ;;  %v268_v49 = vrot.slane %v267_v22, 1  ;;  %529 = vmatpush.msra.mxu1 %v528_v41  ;;  %v273_v25 = vadd.f32 %v272_v34, %v271_v14  ;;  %938 = vmatpush.msrb.mxu2 %v1150_v50 }
  0x85   :  { %v926_v45 = vsel %vm200_vm4, 1.0, %v1074_v12 }
  0x86   :  { %v288_v60 = vrot.slane %v926_v45, 4  ;;  %535 = vmatpush.msra.mxu1 %v534_v53  ;;  %v269_v5 = vadd.f32 %v268_v49, %v267_v22  ;;  %939 = vmatpush.msrb.mxu2 %v1163_v58 }
  0x88   :  { %723 = vmatpush.msrb.mxu1 %v1111_v21  ;;  %v1278_v38 = vmul.f32 0.125, %v269_v5  ;;  %940 = vmatpush.msrb.mxu2 %v1172_v1 }
  0x8a   :  { %725 = vmatpush.msrb.mxu1 %v1114_v24  ;;  %941 = vmatpush.msrb.mxu2 %v1176_v3 }
  0x8b   :  { %v100_v7 = vpop.permute.xlu1 %99  ;;  %v163_v37 = vpop.permute.xlu2 %162 }
  0x8c   :  { %vm194_vm2 = vcmp.eq.s32.totalorder %v100_v7, %v1158_v54  ;;  %v86_v15 = vpop.permute.xlu0 %85  ;;  %vm203_vm6 = vcmp.eq.s32.totalorder %v163_v37, %v1158_v54  ;;  %v274_v7 = vrot.slane %v273_v25, 1  ;;  %727 = vmatpush.msrb.mxu1 %v1126_v30  ;;  %942 = vmatpush.msrb.mxu2 %v1185_v11 }
  0x8d   :  { %v920_v18 = vsel %vm194_vm2, 1.0, %v1074_v12  ;;  %vm192_vm3 = vcmp.eq.s32.totalorder %v86_v15, %v1158_v54  ;;  %v929_v9 = vsel %vm203_vm6, 1.0, %v1074_v12  ;;  %v289_v15 = vadd.f32 %v926_v45, %v288_v60 }
  0x8e   :  { %v252_v26 = vrot.slane %v920_v18, 4  ;;  %v918_v27 = vsel %vm192_vm3, 1.0, %v1074_v12  ;;  %v306_v19 = vrot.slane %v929_v9, 4  ;;  %v275_v24 = vadd.f32 %v274_v7, %v273_v25  ;;  %729 = vmatpush.msrb.mxu1 %v1130_v35  ;;  %943 = vmatpush.msrb.mxu2 %v1197_v20 }
  0x8f   :  { %v240_v28 = vrot.slane %v918_v27, 4  ;;  %v290_v30 = vrot.slane %v289_v15, 2  ;;  %vm378_vm2 = vcmask 1046534   ;;  %vm380_vm3 = vcmask 1047559  }
  0x90   :  { %v253_v48 = vadd.f32 %v920_v18, %v252_v26  ;;  %731 = vmatpush.msrb.mxu1 %v1137_v40  ;;  %v1293_v35 = vadd.f32 %v929_v9, %v306_v19  ;;  %v1306_v25 = vmul.f32 0.125, %v275_v24  ;;  %944 = vmatpush.msrb.mxu2 %v1206_v32 }
  0x91   :  { %v241_v39 = vadd.f32 %v918_v27, %v240_v28 }
  0x92   :  { %v254_v29 = vrot.slane %v253_v48, 2  ;;  %733 = vmatpush.msrb.mxu1 %v1145_v46  ;;  %v308_v1 = vrot.slane %v1293_v35, 2  ;;  %945 = vmatpush.msrb.mxu2 %v1217_v47 }
  0x93   :  { %v107_v51 = vpop.permute.xlu1 %106  ;;  %v242_v56 = vrot.slane %v241_v39, 2  ;;  %v184_v22 = vpop.permute.xlu2 %183 }
  0x94   :  { %vm195_vm5 = vcmp.eq.s32.totalorder %v107_v51, %v1158_v54  ;;  %v93_v59 = vpop.permute.xlu0 %92  ;;  %v255_v21 = vadd.f32 %v254_v29, %v253_v48  ;;  %vm206_vm11 = vcmp.eq.s32.totalorder %v184_v22, %v1158_v54  ;;  %735 = vmatpush.msrb.mxu1 %v1153_v52  ;;  %946 = vmatpush.msrb.mxu2 %v1226_v61 }
  0x95   :  { %v921_v0 = vsel %vm195_vm5, 1.0, %v1074_v12  ;;  %vm193_vm7 = vcmp.eq.s32.totalorder %v93_v59, %v1158_v54  ;;  %v243_v13 = vadd.f32 %v242_v56, %v241_v39  ;;  %v1302_v40 = vsel %vm206_vm11, 1.0, %v1074_v12 }
  0x96   :  { %v258_v4 = vrot.slane %v921_v0, 4  ;;  %v919_v6 = vsel %vm193_vm7, 1.0, %v1074_v12  ;;  %v256_v39 = vrot.slane %v255_v21, 1  ;;  %v1308_v56 = vadd.f32 %v290_v30, %v289_v15  ;;  %737 = vmatpush.msrb.mxu1 %v1161_v57  ;;  %947 = vmatpush.msrb.mxu2 %v1229_v62 }
  0x97   :  { %v246_v17 = vrot.slane %v919_v6, 4  ;;  %v244_v28 = vrot.slane %v243_v13, 1 }
  0x98   :  { %v259_v14 = vadd.f32 %v921_v0, %v258_v4  ;;  %v257_v59 = vadd.f32 %v256_v39, %v255_v21  ;;  %739 = vmatpush.msrb.mxu1 %v1168_v63  ;;  %948 = vmatpush.msrb.mxu2 %v1238_v10  ;;  %v292_v39 = vrot.slane %v1308_v56, 1 }
  0x99   :  { %v247_v26 = vadd.f32 %v919_v6, %v246_v17  ;;  %v245_v49 = vadd.f32 %v244_v28, %v243_v13  ;;  %v324_v6 = vrot.slane %v1302_v40, 4 }
  0x9a   :  { %v260_v18 = vrot.slane %v259_v14, 2  ;;  %741 = vmatpush.msrb.mxu1 %v1181_v8  ;;  %v309_v8 = vadd.f32 %v308_v1, %v1293_v35  ;;  %949 = vmatpush.msrb.mxu2 %v1250_v33 }
  0x9b   :  { %v135_v27 = vpop.permute.xlu1 %134  ;;  %v248_v44 = vrot.slane %v247_v26, 2  ;;  %v336_v5 = vmul.f32 0.125, %v245_v49  ;;  %v325_v32 = vadd.f32 %v1302_v40, %v324_v6  ;;  %v293_v40 = vadd.f32 %v292_v39, %v1308_v56 }
  0x9c   :  { %v261_v31 = vadd.f32 %v260_v18, %v259_v14  ;;  %vm199_vm9 = vcmp.eq.s32.totalorder %v135_v27, %v1158_v54  ;;  %v128_v34 = vpop.permute.xlu0 %127  ;;  %v338_v14 = vmul.f32 0.125, %v257_v59  ;;  %743 = vmatpush.msrb.mxu1 %v1192_v16 }
  0x9d   :  { %v925_v37 = vsel %vm199_vm9, 1.0, %v1074_v12  ;;  %vm198_vm10 = vcmp.eq.s32.totalorder %v128_v34, %v1158_v54  ;;  %v249_v45 = vadd.f32 %v248_v44, %v247_v26  ;;  %v326_v62 = vrot.slane %v325_v32, 2 }
  0x9e   :  { %v282_v41 = vrot.slane %v925_v37, 4  ;;  %v924_v43 = vsel %vm198_vm10, 1.0, %v1074_v12  ;;  %v262_v50 = vrot.slane %v261_v31, 1  ;;  %745 = vmatpush.msrb.mxu1 %v1200_v23 }
  0x9f   :  { %v276_v48 = vrot.slane %v924_v43, 4  ;;  %v250_v58 = vrot.slane %v249_v45, 1 }
  0xa0   :  { %v283_v51 = vadd.f32 %v925_v37, %v282_v41  ;;  %v263_v60 = vadd.f32 %v262_v50, %v261_v31  ;;  %747 = vmatpush.msrb.mxu1 %v1209_v36 }
  0xa1   :  { %v277_v53 = vadd.f32 %v924_v43, %v276_v48  ;;  %v251_v0 = vadd.f32 %v250_v58, %v249_v45 }
  0xa2   :  { %v284_v46 = vrot.slane %v283_v51, 2  ;;  %v339_v57 = vmul.f32 0.125, %v263_v60  ;;  %749 = vmatpush.msrb.mxu1 %v1215_v42 }
  0xa3   :  { %v278_v29 = vrot.slane %v277_v53, 2  ;;  %v156_v4 = vpop.permute.xlu1 %155  ;;  %v337_v52 = vmul.f32 0.125, %v251_v0  ;;  %v344_v0 = vmul.f32 0.125, %v293_v40 }
  0xa4   :  { %v285_v7 = vadd.f32 %v284_v46, %v283_v51  ;;  %vm202_vm15 = vcmp.eq.s32.totalorder %v156_v4, %v1158_v54  ;;  %v149_v9 = vpop.permute.xlu0 %148  ;;  %751 = vmatpush.msrb.mxu1 %v1222_v55 }
  0xa5   :  { %v279_v3 = vadd.f32 %v278_v29, %v277_v53  ;;  %v928_v13 = vsel %vm202_vm15, 1.0, %v1074_v12  ;;  %vm201_vm0 = vcmp.eq.s32.totalorder %v149_v9, %v1158_v54  ;;  %v369_v11 = vsel %vm368_vm8, %v337_v52, %v336_v5 }
  0xa6   :  { %v286_v15 = vrot.slane %v285_v7, 1  ;;  %v300_v17 = vrot.slane %v928_v13, 4  ;;  %v927_v21 = vsel %vm201_vm0, 1.0, %v1074_v12  ;;  %v371_v22 = vsel %vm370_vm12, %v338_v14, %v369_v11  ;;  %753 = vmatpush.msrb.mxu1 %v1232_v2 }
  0xa7   :  { %v280_v18 = vrot.slane %v279_v3, 1  ;;  %v294_v19 = vrot.slane %v927_v21, 4  ;;  %v373_v63 = vsel %vm372_vm13, %v339_v57, %v371_v22  ;;  %v310_v53 = vrot.slane %v309_v8, 1 }
  0xa8   :  { %v287_v26 = vadd.f32 %v286_v15, %v285_v7  ;;  %v301_v27 = vadd.f32 %v928_v13, %v300_v17  ;;  %v375_v34 = vsel %vm374_vm14, %v1278_v38, %v373_v63  ;;  %v327_v7 = vadd.f32 %v326_v62, %v325_v32 }
  0xa9   :  { %v281_v20 = vadd.f32 %v280_v18, %v279_v3  ;;  %v295_v24 = vadd.f32 %v927_v21, %v294_v19  ;;  %v377_v16 = vsel %vm376_vm1, %v1306_v25, %v375_v34  ;;  %v311_v4 = vadd.f32 %v310_v53, %v309_v8 }
  0xaa   :  { %v343_v28 = vmul.f32 0.125, %v287_v26  ;;  %v302_v31 = vrot.slane %v301_v27, 2  ;;  %v328_v2 = vrot.slane %v327_v7, 1  ;;  %vm909_vm15 = vcmask 72704  }
  0xab   :  { %v342_v30 = vmul.f32 0.125, %v281_v20  ;;  %v296_v44 = vrot.slane %v295_v24, 2  ;;  %v177_v37 = vpop.permute.xlu1 %176 }
  0xac   :  { %v303_v41 = vadd.f32 %v302_v31, %v301_v27  ;;  %vm205_vm4 = vcmp.eq.s32.totalorder %v177_v37, %v1158_v54  ;;  %v170_v38 = vpop.permute.xlu0 %169 }
  0xad   :  { %v297_v47 = vadd.f32 %v296_v44, %v295_v24  ;;  %v931_v43 = vsel %vm205_vm4, 1.0, %v1074_v12  ;;  %vm204_vm5 = vcmp.eq.s32.totalorder %v170_v38, %v1158_v54  ;;  %v379_v35 = vsel %vm378_vm2, %v342_v30, %v377_v16 }
  0xae   :  { %v304_v50 = vrot.slane %v303_v41, 1  ;;  %v318_v45 = vrot.slane %v931_v43, 4  ;;  %v930_v48 = vsel %vm204_vm5, 1.0, %v1074_v12  ;;  %v381_v49 = vsel %vm380_vm3, %v343_v28, %v379_v35 }
  0xaf   :  { %v298_v23 = vrot.slane %v297_v47, 1  ;;  %v312_v61 = vrot.slane %v930_v48, 4  ;;  %v1358_v51 = vand.u32 4294901760, %v381_v49 }
  0xb0   :  { %v319_v58 = vadd.f32 %v931_v43, %v318_v45  ;;  %v305_v46 = vadd.f32 %v304_v50, %v303_v41 }
  0xb1   :  { %v299_v25 = vadd.f32 %v298_v23, %v297_v47  ;;  %v313_v59 = vadd.f32 %v930_v48, %v312_v61  ;;  %537 = vmatmul.f32.vlgmr.msra.gmra.mxu1 %v1358_v51  ;;  %v424_v36 = vsub.f32 %v381_v49, %v1358_v51 }
  0xb2   :  { %v320_v1 = vrot.slane %v319_v58, 2  ;;  %v346_v9 = vmul.f32 0.125, %v305_v46 }
  0xb3   :  { %v345_v56 = vmul.f32 0.125, %v299_v25  ;;  %v314_v60 = vrot.slane %v313_v59, 2  ;;  %595 = vmatmul.f32.vlgmr.msra.gmra.mxu2 %v424_v36  ;;  %v425_v42 = vand.u32 4294901760, %v424_v36 }
  0xb4   :  { %v321_v10 = vadd.f32 %v320_v1, %v319_v58  ;;  %v191_v29 = vpop.permute.xlu0 %190 }
  0xb5   :  { %v315_v5 = vadd.f32 %v314_v60, %v313_v59  ;;  %vm207_vm6 = vcmp.eq.s32.totalorder %v191_v29, %v1158_v54  ;;  %639 = vmatmul.f32.vlgmr.msra.gmra.mxu3 %v425_v42  ;;  %v426_v6 = vsub.f32 %v424_v36, %v425_v42  ;;  %v382_v52 = vsel %vm368_vm8, %v345_v56, %v344_v0  ;;  %v828_v0 = vld [vmem:[%s1394_s2] sm:$0x1] }
  0xb6   :  { %v322_v55 = vrot.slane %v321_v10, 1  ;;  %v933_v33 = vsel %vm207_vm6, 1.0, %v1074_v12  ;;  %v383_v57 = vsel %vm370_vm12, %v346_v9, %v382_v52  ;;  %v347_v54 = vmul.f32 0.125, %v311_v4 }
  0xb7   :  { %v316_v3 = vrot.slane %v315_v5, 1  ;;  %v330_v13 = vrot.slane %v933_v33, 4  ;;  %v427_v14 = vand.u32 4294901760, %v426_v6  ;;  %v329_v12 = vadd.f32 %v328_v2, %v327_v7 }
  0xb8   :  { %v323_v15 = vadd.f32 %v322_v55, %v321_v10  ;;  %v384_v22 = vsel %vm372_vm13, %v347_v54, %v383_v57  ;;  %v1075_v10 = vmov 0   ;;  %vm874_vm13 = vcmask 64512  }
  0xb9   :  { %v317_v17 = vadd.f32 %v316_v3, %v315_v5  ;;  %v331_v21 = vadd.f32 %v933_v33, %v330_v13  ;;  %428 = vmatmul.f32.vlgmr.msra.gmra.mxu0 %v427_v14  ;;  %v350_v28 = vmul.f32 0.125, %v329_v12  ;;  %980 = vset.pattern.permute.xlu1 %v1075_v10 }
  0xba   :  { %v349_v19 = vmul.f32 0.125, %v323_v15 }
  0xbb   :  { %v348_v11 = vmul.f32 0.125, %v317_v17  ;;  %v332_v18 = vrot.slane %v331_v21, 2 }
  0xbd   :  { %v333_v26 = vadd.f32 %v332_v18, %v331_v21  ;;  %v385_v27 = vsel %vm374_vm14, %v348_v11, %v384_v22 }
  0xbe   :  { %v386_v24 = vsel %vm376_vm1, %v349_v19, %v385_v27  ;;  %v982_v27 = vld [vmem:[%s1394_s2] ss:$0 sm:$0xff] }
  0xbf   :  { %v334_v63 = vrot.slane %v333_v26, 1  ;;  %v387_v34 = vsel %vm378_vm2, %v350_v28, %v386_v24 }
  0xc1   :  { %v335_v20 = vadd.f32 %v334_v63, %v333_v26 }
  0xc3   :  { %v351_v31 = vmul.f32 0.125, %v335_v20 }
  0xc5   :  { %v388_v8 = vsel %vm380_vm3, %v351_v31, %v387_v34 }
  0xc6   :  { %v431_v32 = vand.u32 4294901760, %v388_v8 }
  0xc8   :  { %541 = vmatmul.f32.gmra.mxu1 %v431_v32  ;;  %v432_v30 = vsub.f32 %v388_v8, %v431_v32 }
  0xca   :  { %600 = vmatmul.f32.gmra.mxu2 %v432_v30  ;;  %v433_v44 = vand.u32 4294901760, %v432_v30 }
  0xcc   :  { %645 = vmatmul.f32.gmra.mxu3 %v433_v44  ;;  %v434_v37 = vsub.f32 %v432_v30, %v433_v44 }
  0xce   :  { %v435_v39 = vand.u32 4294901760, %v434_v37 }
  0xd0   :  { %436 = vmatmul.f32.gmra.mxu0 %v435_v39  ;;  %755 = vmatmul.f32.vlgmr.msrb.gmra.mxu1 %v1358_v51 }
  0xd2   :  { %718 = vmatmul.f32.vlgmr.msrb.gmra.mxu2 %v431_v32 }
  0xd4   :  { %759 = vmatmul.f32.vlgmr.msrb.gmra.mxu3 %v431_v32 }
  0xd8   :  { %714 = vmatmul.f32.vlgmr.msrb.gmra.mxu0 %v1358_v51 }
 0x12e   :  { %v538_v41 = vpop.f32.mrf.mxu1 }
 0x136   :  { %v429_v38 = vpop.f32.mrf.mxu0  ;;  %v596_v16 = vpop.f32.mrf.mxu2 }
 0x137   :  { %v539_v43 = vadd.f32 %v538_v41, %v429_v38 }
 0x138   :  { %v640_v47 = vpop.f32.mrf.mxu3 }
 0x139   :  { %v597_v23 = vadd.f32 %v596_v16, %v539_v43 }
 0x13b   :  { %v641_v40 = vadd.f32 %v640_v47, %v597_v23 }
 0x145   :  { %v542_v35 = vpop.f32.mrf.mxu1 }
 0x14d   :  { %v437_v50 = vpop.f32.mrf.mxu0  ;;  %v601_v45 = vpop.f32.mrf.mxu2 }
 0x14e   :  { %v543_v48 = vadd.f32 %v542_v35, %v437_v50  ;;  %v756_v62 = vpop.f32.mrf.mxu1 }
 0x14f   :  { %v646_v49 = vpop.f32.mrf.mxu3 }
 0x150   :  { %v602_v61 = vadd.f32 %v601_v45, %v543_v48 }
 0x152   :  { %v647_v58 = vadd.f32 %v646_v49, %v602_v61 }
 0x155   :  { %v715_v53 = vpop.f32.mrf.mxu0  ;;  %v719_v25 = vpop.f32.mrf.mxu2 }
 0x156   :  { %v716_v59 = vadd.f32 %v715_v53, %v641_v40  ;;  %v720_v36 = vadd.f32 %v719_v25, %v647_v58 }
 0x157   :  { %v760_v51 = vpop.f32.mrf.mxu3 }
 0x158   :  { %v757_v46 = vadd.f32 %v756_v62, %v716_v59  ;;  %v761_v1 = vadd.f32 %v760_v51, %v720_v36 }
 0x15a   :  { %v766_v56 = vmul.f32 %v757_v46, %v757_v46  ;;  %v769_v60 = vmul.f32 %v761_v1, %v761_v1  ;;  %v763_v42 = vmul.f32 %v761_v1, %v757_v46 }
 0x15c   :  { %767 = vadd.xlane.f32.xlu1 %v766_v56  ;;  %770 = vadd.xlane.f32.xlu2 %v769_v60 }
 0x15d   :  { %764 = vadd.xlane.f32.xlu0 %v763_v42 }
 0x185   :  { %829 = vxpose.xlu2.b32.start.end [1/1] (short) (narrow) %v828_v0, 8 }
 0x1cf   :  { %v768_v29 = vpop.xlane.xlu1 %767  ;;  %v771_v4 = vpop.xlane.xlu2 %770 }
 0x1d0   :  { %v772_v5 = vmax.f32 %v768_v29, 1e-16  ;;  %v784_v6 = vmax.f32 %v771_v4, 1e-16  ;;  %v765_v54 = vpop.xlane.xlu0 %764 }
 0x1d2   :  { %983 = vrsqrt.f32 %v772_v5  ;;  %vm779_vm8 = vweird.f32 %v772_v5  ;;  %vm791_vm11 = vweird.f32 %v784_v6 }
 0x1d3   :  { %985 = vrsqrt.f32 %v784_v6 }
 0x1d8   :  { %v984_v7 = vpop.eup %983 }
 0x1d9   :  { %v986_v9 = vpop.eup %985  ;;  %v774_v55 = vmul.f32 %v984_v7, %v772_v5  ;;  %vm780_vm7 = vweird.f32 %v984_v7 }
 0x1da   :  { %v786_v33 = vmul.f32 %v986_v9, %v784_v6  ;;  %vm792_vm9 = vweird.f32 %v986_v9  ;;  %vm781_vm10 = vmor %vm779_vm8, %vm780_vm7 }
 0x1db   :  { %v775_v52 = vmul.f32 %v984_v7, %v774_v55  ;;  %vm793_vm12 = vmor %vm791_vm11, %vm792_vm9 }
 0x1dc   :  { %v787_v3 = vmul.f32 %v986_v9, %v786_v33 }
 0x1dd   :  { %v776_v13 = vmul.f32 0.5, %v775_v52 }
 0x1de   :  { %v788_v14 = vmul.f32 0.5, %v787_v3 }
 0x1df   :  { %v777_v15 = vsub.f32 1.5, %v776_v13 }
 0x1e0   :  { %v789_v17 = vsub.f32 1.5, %v788_v14 }
 0x1e1   :  { %v778_v21 = vmul.f32 %v984_v7, %v777_v15 }
 0x1e2   :  { %v790_v2 = vmul.f32 %v986_v9, %v789_v17 }
 0x1e3   :  { %v782_v57 = vsel %vm781_vm10, %v984_v7, %v778_v21 }
 0x1e4   :  { %v783_v11 = vmul.f32 %v782_v57, %v765_v54  ;;  %v794_v18 = vsel %vm793_vm12, %v986_v9, %v790_v2 }
 0x1e6   :  { %v795_v19 = vmul.f32 %v794_v18, %v783_v11 }
 0x1e8   :  { %796 = vxpose.xlu0.b32.start.end [1/1] (short) (narrow) %v795_v19, 8 }
 0x21e   :  { %v845_v22 = vpop.trf.xlu2 }
 0x21f   :  { %866 = vperm.xlu1 %980, %v845_v22  }
 0x24f   :  { %981 = vset.pattern.permute.xlu0 %v1075_v10 }
 0x28c   :  { %v812_v26 = vpop.trf.xlu0 }
 0x28d   :  { %v870_v12 = vperm.slane %v812_v26, 0 }
 0x28f   :  { %v871_v63 = vsub.f32 %v795_v19, %v870_v12 }
 0x291   :  { %v872_v20 = vmul.f32 20.0, %v871_v63  ;;  %v867_v24 = vpop.permute.xlu1 %866 }
 0x292   :  { %vm869_vm14 = vcmp.gt.f32.partialorder %v982_v27, %v867_v24 }
 0x293   :  { %v873_v28 = vsel %vm869_vm14, %v872_v20, -1e+30 }
 0x294   :  { %v875_v31 = vsel %vm874_vm13, %v873_v28, -inf }
 0x295   :  { %876 = vmax.xlane.f32.xlu1 %v875_v31 }
 0x308   :  { %v877_v34 = vpop.xlane.xlu1 %876 }
 0x309   :  { %v878_v8 = vrot.slane %v877_v34, 4 }
 0x30b   :  { %v879_v32 = vmax.f32 %v877_v34, %v878_v8 }
 0x30d   :  { %v880_v30 = vrot.slane %v879_v32, 2 }
 0x30f   :  { %v881_v44 = vmax.f32 %v879_v32, %v880_v30 }
 0x311   :  { %v882_v37 = vrot.slane %v881_v44, 1 }
 0x313   :  { %v883_v39 = vmax.f32 %v881_v44, %v882_v37 }
 0x315   :  { %966 = vpush %v883_v39 }
 0x346   :  { %s967_s7 = spop %966 }
 0x347   :  { %v885_v41 = vstv %s967_s7 }
 0x348   :  { %v886_v38 = vmax.f32 %v885_v41, 0.0 }
 0x34a   :  { %v887_v16 = vsub.f32 %v873_v28, %v886_v38  ;;  %v901_v58 = vsub.f32 0.0, %v886_v38 }
 0x34c   :  { %v888_v47 = vmul.f32 1.442695, %v887_v16  ;;  %v902_v53 = vmul.f32 1.442695, %v901_v58 }
 0x34e   :  { %987 = vpow2.f32 %v888_v47 }
 0x34f   :  { %989 = vpow2.f32 %v902_v53 }
 0x354   :  { %v988_v43 = vpop.eup %987 }
 0x355   :  { %v890_v35 = vsel %vm874_vm13, %v988_v43, 0.0  ;;  %v990_v25 = vpop.eup %989 }
 0x356   :  { %891 = vadd.xlane.f32.xlu2 %v890_v35 }
 0x3c9   :  { %v892_v50 = vpop.xlane.xlu2 %891 }
 0x3ca   :  { %v893_v45 = vrot.slane %v892_v50, 4 }
 0x3cc   :  { %v894_v48 = vadd.f32 %v893_v45, %v892_v50 }
 0x3ce   :  { %v895_v49 = vrot.slane %v894_v48, 2 }
 0x3d0   :  { %v896_v23 = vadd.f32 %v895_v49, %v894_v48 }
 0x3d2   :  { %v897_v61 = vrot.slane %v896_v23, 1 }
 0x3d4   :  { %v898_v40 = vadd.f32 %v897_v61, %v896_v23 }
 0x3d6   :  { %968 = vpush %v898_v40 }
 0x407   :  { %s969_s2 = spop %968 }
 0x408   :  { %v900_v59 = vstv %s969_s2 }
 0x409   :  { %v904_v36 = vadd.f32 %v990_v25, %v900_v59 }
 0x40b   :  { %991 = vlog2.f32 %v904_v36 }
 0x411   :  { %v992_v62 = vpop.eup %991 }
 0x412   :  { %v906_v51 = vmul.f32 0.6931472, %v992_v62 }
 0x414   :  { %v907_v46 = vadd.f32 %v906_v51, %v886_v38 }
 0x416   :  { %v908_v1 = vsel %vm874_vm13, %v812_v26, %v907_v46 }
 0x417   :  { %v910_v56 = vsel %vm909_vm15, %v908_v1, 0.0 }
 0x418   :  { %911 = vst [vmem:[%s1396_s4] sm:$0x1] %v910_v56 }
 0x419   :  { %916 = vsyncpa [#allocation3], 1 }
 0x41a   :  { %917 = vsyncpa [#allocation5], 1 }

</bundles_post_ra>
